<compile_context>
chip_gen: v5e
topology: v5e:2x2
jax: 0.10.0
libtpu: 0.0.40
codegen_flags: <defaults>
</compile_context>

<pallas_src>
import functools

import jax
import jax.numpy as jnp
from jax.experimental import pallas as pl
from jax.experimental.pallas import tpu as pltpu


# ----------------------------- depthwise grouped conv kernel -----------------
def _dw_conv_kernel(w_ref, b_ref, x_ref, o_ref, *scratch,
                    s, k, mult, c_in, cc, th, cast_input):
    """One batch image per grid step.

    w_ref : (mult, K*K, C)              f32 tap weights, lanes = C
    b_ref : (mult, 1,  C)               f32 bias
    x_ref : (H_out+1, s, W_out+1, s*C)  padded input, W-phase folded onto lanes
    o_ref : (H_out, W_out, mult*C)      channels-last output, m folded on lanes
    scratch (only when input != f32):   f32 copy of the x block
    """
    h_out, w_out, _ = o_ref.shape

    if cast_input:
        xf_ref = scratch[0]
        # One cast pass per step (instead of per-tap / per-m casts): v5e has no
        # bf16 VALU path, so this is ~K^2*mult cheaper.
        xf_ref[...] = x_ref[...].astype(jnp.float32)
        src = xf_ref
    else:
        src = x_ref

    for c_idx in range(c_in // cc):            # lane chunks, vreg-file sized
        c0 = c_idx * cc
        for m in range(mult):                  # m OUTER -> one live accumulator
            bias = b_ref[m:m + 1, :, c0:c0 + cc]           # (1, 1, cc) f32
            for h0 in range(0, h_out, th):     # row bands keep acc+tap in vregs
                hb = min(th, h_out - h0)
                acc = jnp.broadcast_to(bias, (hb, w_out, cc))   # bias-init
                t = 0
                for kh in range(k):            # static unroll over K*K taps
                    rh, qh = kh % s, kh // s
                    for kw in range(k):
                        rw, qw = kw % s, kw // s
                        # Unstrided shifted slice of the resident block == the
                        # (kh, kw) tap: H phase via the (H_out+1, s) split,
                        # W phase via the lane-group offset rw*C.
                        tap = src[h0 + qh:h0 + qh + hb, rh,
                                  qw:qw + w_out,
                                  rw * c_in + c0:rw * c_in + c0 + cc]
                        acc = acc + tap.astype(jnp.float32) * \
                            w_ref[m:m + 1, t:t + 1, c0:c0 + cc]
                        t += 1
                o_ref[h0:h0 + hb, :,
                      m * c_in + c0:m * c_in + c0 + cc] = acc.astype(o_ref.dtype)


# ----------------------------- linear (cls_token) kernel ---------------------
def _linear_kernel(x_ref, w_ref, b_ref, o_ref):
    # x_ref: (B, C_in), w_ref: (C_in, C_out) pre-transposed -> plain MXU dot.
    acc = jnp.dot(x_ref[...], w_ref[...], preferred_element_type=jnp.float32)
    o_ref[...] = (acc + b_ref[...].astype(jnp.float32)).astype(o_ref.dtype)


def _pick_chunk(c_in, h_out, w_out):
    """Lane-chunk width `cc` and H row-band `th`, sized to the 64-vreg register
    file (acc + tap <= ~48 vregs), NOT to VMEM capacity."""
    row128 = -(-w_out // 8)                    # vregs / output row / 128 lanes
    if c_in % 128 != 0:
        cc = c_in                              # single (possibly narrow) chunk
    elif c_in % 256 == 0 and h_out * row128 <= 12:
        cc = 256
    else:
        cc = 128
    per_row = row128 * (-(-cc // 128))
    th = max(1, min(h_out, 24 // per_row))
    return cc, th


# ----------------------------- module forward --------------------------------
@functools.partial(jax.jit, static_argnums=(3,))
def conv_head_pooling_fwd(x, cls_token, params, stride):
    w_conv = params["conv_w"]  # (C_out, 1, K, K), groups = C_in
    b_conv = params["conv_b"]  # (C_out,)
    w_fc = params["fc_w"]      # (C_out, C_in)  torch.nn.Linear convention
    b_fc = params["fc_b"]      # (C_out,)

    B, C_in, H, W = x.shape
    C_out = w_conv.shape[0]
    assert C_out % C_in == 0, "grouped conv requires C_out % C_in == 0"
    mult = C_out // C_in
    s = stride
    K = s + 1
    pad = s // 2
    H_out = (H + 2 * pad - K) // s + 1
    W_out = (W + 2 * pad - K) // s + 1
    Hp = s * (H_out + 1)
    Wp = s * (W_out + 1)
    assert Hp - H - pad >= 0 and Wp - W - pad >= 0, "padding bookkeeping bug"

    # ---- glue: ONE fused pad+transpose pass over x (NCHW -> padded NHWC) ----
    x_nhwc = jnp.transpose(x, (0, 2, 3, 1))
    xp = jnp.pad(x_nhwc,
                 ((0, 0), (pad, Hp - H - pad), (pad, Wp - W - pad), (0, 0)))
    # Free (contiguous) reshape: split H into (H_out+1, s) and fold the W-phase
    # onto the lane axis together with the channels:
    #   xr[b, a, rh, c, rw*C + ci] = xp[b, s*a + rh, s*c + rw, ci]
    xr = xp.reshape(B, H_out + 1, s, W_out + 1, s * C_in)

    # weights: co = ci*mult + m  ->  (mult, K*K, C), lanes = C
    w_k = w_conv.reshape(C_in, mult, K * K).transpose(1, 2, 0).astype(
        jnp.float32)
    b_k = b_conv.reshape(C_in, mult).transpose(1, 0).reshape(
        mult, 1, C_in).astype(jnp.float32)

    cc, th = _pick_chunk(C_in, H_out, W_out)
    cast_input = x.dtype != jnp.float32
    scratch_shapes = (
        [pltpu.VMEM((H_out + 1, s, W_out + 1, s * C_in), jnp.float32)]
        if cast_input else [])

    kernel = functools.partial(
        _dw_conv_kernel, s=s, k=K, mult=mult, c_in=C_in, cc=cc, th=th,
        cast_input=cast_input)

    y_cl = pl.pallas_call(
        kernel,
        out_shape=jax.ShapeDtypeStruct((B, H_out, W_out, mult * C_in), x.dtype),
        grid=(B,),
        in_specs=[
            pl.BlockSpec((mult, K * K, C_in), lambda b: (0, 0, 0)),
            pl.BlockSpec((mult, 1, C_in), lambda b: (0, 0, 0)),
            pl.BlockSpec((None, H_out + 1, s, W_out + 1, s * C_in),
                         lambda b: (b, 0, 0, 0, 0)),
        ],
        out_specs=pl.BlockSpec((None, H_out, W_out, mult * C_in),
                               lambda b: (b, 0, 0, 0)),
        scratch_shapes=scratch_shapes,
        compiler_params=pltpu.CompilerParams(
            dimension_semantics=("parallel",)),
    )(w_k, b_k, xr)

    # Channels-last -> NCHW (co = ci*mult + m).  Single fused transpose+reshape
    # copy over y; required by the module contract, and keeping the kernel's
    # stores channels-last keeps them lane-dense.
    y = jnp.transpose(
        y_cl.reshape(B, H_out, W_out, mult, C_in),
        (0, 4, 3, 1, 2)).reshape(B, C_out, H_out, W_out)

    # ---- fc on cls_token: tiny single-block MXU dot, weight pre-transposed --
    cls2 = cls_token.reshape(B, C_in)
    cls_out = pl.pallas_call(
        _linear_kernel,
        out_shape=jax.ShapeDtypeStruct((B, C_out), cls2.dtype),
    )(cls2, jnp.transpose(w_fc), b_fc.reshape(1, C_out)).reshape(B, 1, C_out)

    return y, cls_out


# ----------------------------- demo / self-check ------------------------------
def _run_case(name, B, C_in, H, W, stride, mult, dtype, seed_key):
    C_out = C_in * mult
    K = stride + 1
    k0, k1, k2, k3, k4, k5 = jax.random.split(seed_key, 6)
    x = jax.random.normal(k0, (B, C_in, H, W), jnp.float32).astype(dtype)
    cls_token = jax.random.normal(k1, (B, 1, C_in), jnp.float32).astype(dtype)
    params = {
        "conv_w": (0.1 * jax.random.normal(k2, (C_out, 1, K, K),
                                           jnp.float32)).astype(dtype),
        "conv_b": (0.1 * jax.random.normal(k3, (C_out,),
                                           jnp.float32)).astype(dtype),
        "fc_w": (0.1 * jax.random.normal(k4, (C_out, C_in),
                                         jnp.float32)).astype(dtype),
        "fc_b": (0.1 * jax.random.normal(k5, (C_out,),
                                         jnp.float32)).astype(dtype),
    }

    y, cls_out = conv_head_pooling_fwd(x, cls_token, params, stride)
    jax.block_until_ready((y, cls_out))

    # pure-JAX f32 reference (same semantics as the PyTorch module)
    ref_y = jax.lax.conv_general_dilated(
        x.astype(jnp.float32), params["conv_w"].astype(jnp.float32),
        (stride, stride), [(stride // 2, stride // 2)] * 2,
        dimension_numbers=("NCHW", "OIHW", "NCHW"),
        feature_group_count=C_in,
        precision=jax.lax.Precision.HIGHEST,
    ) + params["conv_b"].astype(jnp.float32)[None, :, None, None]
    ref_cls = (cls_token.astype(jnp.float32)
               @ params["fc_w"].astype(jnp.float32).T
               + params["fc_b"].astype(jnp.float32))

    pad = stride // 2
    H_out = (H + 2 * pad - K) // stride + 1
    W_out = (W + 2 * pad - K) // stride + 1
    assert y.shape == (B, C_out, H_out, W_out), (name, y.shape)
    assert cls_out.shape == (B, 1, C_out), (name, cls_out.shape)

    if dtype == jnp.float32:
        conv_tol, fc_tol = 1e-4, 5e-3
    else:
        conv_tol, fc_tol = 3e-2, 3e-2
    assert jnp.allclose(y.astype(jnp.float32), ref_y,
                        atol=conv_tol, rtol=conv_tol), name
    assert jnp.allclose(cls_out.astype(jnp.float32), ref_cls,
                        atol=fc_tol, rtol=fc_tol), name


if __name__ == "__main__":
    root = jax.random.PRNGKey(0)
    #        name               B  C_in   H   W  stride mult dtype
    cases = [
        ("stride2_base",        2,   4,  16, 16, 2, 2, jnp.float32),
        ("stride1_mult1",       1,   4,   8,  8, 1, 1, jnp.float32),
        ("stride3_odd_hw",      2,   4,  15, 13, 3, 3, jnp.float32),
        ("stride2_c64",         2,  64,   8,  8, 2, 2, jnp.float32),
        ("stride2_c256_bf16",   2, 256,  28, 28, 2, 2, jnp.bfloat16),
    ]
    for i, (name, B, C_in, H, W, stride, mult, dtype) in enumerate(cases):
        _run_case(name, B, C_in, H, W, stride, mult, dtype,
                  jax.random.fold_in(root, i))
    print("KERNEL_OK")
</pallas_src>

<mosaic_0001>
module attributes {stable_mosaic.version = 11 : i64} {
  func.func @_dw_conv_kernel(%arg0: i32, %arg1: memref<2x9x4xf32, #tpu.memory_space<vmem>>, %arg2: memref<2x1x4xf32, #tpu.memory_space<vmem>>, %arg3: memref<1x9x2x9x8xf32, #tpu.memory_space<vmem>>, %arg4: memref<1x8x8x8xf32, #tpu.memory_space<vmem>>) attributes {dimension_semantics = [#tpu.dimension_semantics<parallel>], iteration_bounds = array<i64: 2>, scalar_prefetch = 0 : i64, scratch_operands = 0 : i64, tpu.core_type = #tpu.core_type<tc>, window_params = [{pipeline_mode = #tpu.pipeline_mode<synchronous>, transform_indices = @transform_0, window_bounds = array<i64: 2, 9, 4>}, {pipeline_mode = #tpu.pipeline_mode<synchronous>, transform_indices = @transform_1, window_bounds = array<i64: 2, 1, 4>}, {transform_indices = @transform_2, window_bounds = array<i64: 1, 9, 2, 9, 8>}, {transform_indices = @transform_3, window_bounds = array<i64: 1, 8, 8, 8>}]} {
    %c0 = arith.constant 0 : index
    %c0_0 = arith.constant 0 : index
    %c0_1 = arith.constant 0 : index
    %0 = vector.load %arg2[%c0, %c0_0, %c0_1] : memref<2x1x4xf32, #tpu.memory_space<vmem>>, vector<1x1x4xf32>
    %1 = vector.shape_cast %0 : vector<1x1x4xf32> to vector<1x1x4xf32>
    %2 = vector.broadcast %1 : vector<1x1x4xf32> to vector<8x8x4xf32>
    %c0_2 = arith.constant 0 : index
    %c0_3 = arith.constant 0 : index
    %c0_4 = arith.constant 0 : index
    %c0_5 = arith.constant 0 : index
    %c0_6 = arith.constant 0 : index
    %3 = vector.load %arg3[%c0_2, %c0_3, %c0_4, %c0_5, %c0_6] : memref<1x9x2x9x8xf32, #tpu.memory_space<vmem>>, vector<1x8x1x8x4xf32>
    %4 = vector.shape_cast %3 : vector<1x8x1x8x4xf32> to vector<8x8x4xf32>
    %c0_7 = arith.constant 0 : index
    %c0_8 = arith.constant 0 : index
    %c0_9 = arith.constant 0 : index
    %5 = vector.load %arg1[%c0_7, %c0_8, %c0_9] : memref<2x9x4xf32, #tpu.memory_space<vmem>>, vector<1x1x4xf32>
    %6 = vector.broadcast %5 : vector<1x1x4xf32> to vector<8x8x4xf32>
    %7 = arith.mulf %4, %6 : vector<8x8x4xf32>
    %8 = arith.addf %2, %7 : vector<8x8x4xf32>
    %c0_10 = arith.constant 0 : index
    %c0_11 = arith.constant 0 : index
    %c0_12 = arith.constant 0 : index
    %c0_13 = arith.constant 0 : index
    %c4 = arith.constant 4 : index
    %9 = vector.load %arg3[%c0_10, %c0_11, %c0_12, %c0_13, %c4] : memref<1x9x2x9x8xf32, #tpu.memory_space<vmem>>, vector<1x8x1x8x4xf32>
    %10 = vector.shape_cast %9 : vector<1x8x1x8x4xf32> to vector<8x8x4xf32>
    %c0_14 = arith.constant 0 : index
    %c1 = arith.constant 1 : index
    %c0_15 = arith.constant 0 : index
    %11 = vector.load %arg1[%c0_14, %c1, %c0_15] : memref<2x9x4xf32, #tpu.memory_space<vmem>>, vector<1x1x4xf32>
    %12 = vector.broadcast %11 : vector<1x1x4xf32> to vector<8x8x4xf32>
    %13 = arith.mulf %10, %12 : vector<8x8x4xf32>
    %14 = arith.addf %8, %13 : vector<8x8x4xf32>
    %c0_16 = arith.constant 0 : index
    %c0_17 = arith.constant 0 : index
    %c0_18 = arith.constant 0 : index
    %c1_19 = arith.constant 1 : index
    %c0_20 = arith.constant 0 : index
    %15 = vector.load %arg3[%c0_16, %c0_17, %c0_18, %c1_19, %c0_20] : memref<1x9x2x9x8xf32, #tpu.memory_space<vmem>>, vector<1x8x1x8x4xf32>
    %16 = vector.shape_cast %15 : vector<1x8x1x8x4xf32> to vector<8x8x4xf32>
    %c0_21 = arith.constant 0 : index
    %c2 = arith.constant 2 : index
    %c0_22 = arith.constant 0 : index
    %17 = vector.load %arg1[%c0_21, %c2, %c0_22] : memref<2x9x4xf32, #tpu.memory_space<vmem>>, vector<1x1x4xf32>
    %18 = vector.broadcast %17 : vector<1x1x4xf32> to vector<8x8x4xf32>
    %19 = arith.mulf %16, %18 : vector<8x8x4xf32>
    %20 = arith.addf %14, %19 : vector<8x8x4xf32>
    %c0_23 = arith.constant 0 : index
    %c0_24 = arith.constant 0 : index
    %c1_25 = arith.constant 1 : index
    %c0_26 = arith.constant 0 : index
    %c0_27 = arith.constant 0 : index
    %21 = vector.load %arg3[%c0_23, %c0_24, %c1_25, %c0_26, %c0_27] : memref<1x9x2x9x8xf32, #tpu.memory_space<vmem>>, vector<1x8x1x8x4xf32>
    %22 = vector.shape_cast %21 : vector<1x8x1x8x4xf32> to vector<8x8x4xf32>
    %c0_28 = arith.constant 0 : index
    %c3 = arith.constant 3 : index
    %c0_29 = arith.constant 0 : index
    %23 = vector.load %arg1[%c0_28, %c3, %c0_29] : memref<2x9x4xf32, #tpu.memory_space<vmem>>, vector<1x1x4xf32>
    %24 = vector.broadcast %23 : vector<1x1x4xf32> to vector<8x8x4xf32>
    %25 = arith.mulf %22, %24 : vector<8x8x4xf32>
    %26 = arith.addf %20, %25 : vector<8x8x4xf32>
    %c0_30 = arith.constant 0 : index
    %c0_31 = arith.constant 0 : index
    %c1_32 = arith.constant 1 : index
    %c0_33 = arith.constant 0 : index
    %c4_34 = arith.constant 4 : index
    %27 = vector.load %arg3[%c0_30, %c0_31, %c1_32, %c0_33, %c4_34] : memref<1x9x2x9x8xf32, #tpu.memory_space<vmem>>, vector<1x8x1x8x4xf32>
    %28 = vector.shape_cast %27 : vector<1x8x1x8x4xf32> to vector<8x8x4xf32>
    %c0_35 = arith.constant 0 : index
    %c4_36 = arith.constant 4 : index
    %c0_37 = arith.constant 0 : index
    %29 = vector.load %arg1[%c0_35, %c4_36, %c0_37] : memref<2x9x4xf32, #tpu.memory_space<vmem>>, vector<1x1x4xf32>
    %30 = vector.broadcast %29 : vector<1x1x4xf32> to vector<8x8x4xf32>
    %31 = arith.mulf %28, %30 : vector<8x8x4xf32>
    %32 = arith.addf %26, %31 : vector<8x8x4xf32>
    %c0_38 = arith.constant 0 : index
    %c0_39 = arith.constant 0 : index
    %c1_40 = arith.constant 1 : index
    %c1_41 = arith.constant 1 : index
    %c0_42 = arith.constant 0 : index
    %33 = vector.load %arg3[%c0_38, %c0_39, %c1_40, %c1_41, %c0_42] : memref<1x9x2x9x8xf32, #tpu.memory_space<vmem>>, vector<1x8x1x8x4xf32>
    %34 = vector.shape_cast %33 : vector<1x8x1x8x4xf32> to vector<8x8x4xf32>
    %c0_43 = arith.constant 0 : index
    %c5 = arith.constant 5 : index
    %c0_44 = arith.constant 0 : index
    %35 = vector.load %arg1[%c0_43, %c5, %c0_44] : memref<2x9x4xf32, #tpu.memory_space<vmem>>, vector<1x1x4xf32>
    %36 = vector.broadcast %35 : vector<1x1x4xf32> to vector<8x8x4xf32>
    %37 = arith.mulf %34, %36 : vector<8x8x4xf32>
    %38 = arith.addf %32, %37 : vector<8x8x4xf32>
    %c0_45 = arith.constant 0 : index
    %c1_46 = arith.constant 1 : index
    %c0_47 = arith.constant 0 : index
    %c0_48 = arith.constant 0 : index
    %c0_49 = arith.constant 0 : index
    %39 = vector.load %arg3[%c0_45, %c1_46, %c0_47, %c0_48, %c0_49] : memref<1x9x2x9x8xf32, #tpu.memory_space<vmem>>, vector<1x8x1x8x4xf32>
    %40 = vector.shape_cast %39 : vector<1x8x1x8x4xf32> to vector<8x8x4xf32>
    %c0_50 = arith.constant 0 : index
    %c6 = arith.constant 6 : index
    %c0_51 = arith.constant 0 : index
    %41 = vector.load %arg1[%c0_50, %c6, %c0_51] : memref<2x9x4xf32, #tpu.memory_space<vmem>>, vector<1x1x4xf32>
    %42 = vector.broadcast %41 : vector<1x1x4xf32> to vector<8x8x4xf32>
    %43 = arith.mulf %40, %42 : vector<8x8x4xf32>
    %44 = arith.addf %38, %43 : vector<8x8x4xf32>
    %c0_52 = arith.constant 0 : index
    %c1_53 = arith.constant 1 : index
    %c0_54 = arith.constant 0 : index
    %c0_55 = arith.constant 0 : index
    %c4_56 = arith.constant 4 : index
    %45 = vector.load %arg3[%c0_52, %c1_53, %c0_54, %c0_55, %c4_56] : memref<1x9x2x9x8xf32, #tpu.memory_space<vmem>>, vector<1x8x1x8x4xf32>
    %46 = vector.shape_cast %45 : vector<1x8x1x8x4xf32> to vector<8x8x4xf32>
    %c0_57 = arith.constant 0 : index
    %c7 = arith.constant 7 : index
    %c0_58 = arith.constant 0 : index
    %47 = vector.load %arg1[%c0_57, %c7, %c0_58] : memref<2x9x4xf32, #tpu.memory_space<vmem>>, vector<1x1x4xf32>
    %48 = vector.broadcast %47 : vector<1x1x4xf32> to vector<8x8x4xf32>
    %49 = arith.mulf %46, %48 : vector<8x8x4xf32>
    %50 = arith.addf %44, %49 : vector<8x8x4xf32>
    %c0_59 = arith.constant 0 : index
    %c1_60 = arith.constant 1 : index
    %c0_61 = arith.constant 0 : index
    %c1_62 = arith.constant 1 : index
    %c0_63 = arith.constant 0 : index
    %51 = vector.load %arg3[%c0_59, %c1_60, %c0_61, %c1_62, %c0_63] : memref<1x9x2x9x8xf32, #tpu.memory_space<vmem>>, vector<1x8x1x8x4xf32>
    %52 = vector.shape_cast %51 : vector<1x8x1x8x4xf32> to vector<8x8x4xf32>
    %c0_64 = arith.constant 0 : index
    %c8 = arith.constant 8 : index
    %c0_65 = arith.constant 0 : index
    %53 = vector.load %arg1[%c0_64, %c8, %c0_65] : memref<2x9x4xf32, #tpu.memory_space<vmem>>, vector<1x1x4xf32>
    %54 = vector.broadcast %53 : vector<1x1x4xf32> to vector<8x8x4xf32>
    %55 = arith.mulf %52, %54 : vector<8x8x4xf32>
    %56 = arith.addf %50, %55 : vector<8x8x4xf32>
    %c0_66 = arith.constant 0 : index
    %c0_67 = arith.constant 0 : index
    %c0_68 = arith.constant 0 : index
    %c0_69 = arith.constant 0 : index
    %57 = vector.load %arg4[%c0_66, %c0_67, %c0_68, %c0_69] : memref<1x8x8x8xf32, #tpu.memory_space<vmem>>, vector<1x8x8x4xf32>
    %58 = vector.shape_cast %57 : vector<1x8x8x4xf32> to vector<8x8x4xf32>
    %59 = vector.shape_cast %56 : vector<8x8x4xf32> to vector<1x8x8x4xf32>
    tpu.vector_store %arg4[%c0_66, %c0_67, %c0_68, %c0_69], %59 {strides = array<i32>} : memref<1x8x8x8xf32, #tpu.memory_space<vmem>>, vector<1x8x8x4xf32>,
    %c1_70 = arith.constant 1 : index
    %c0_71 = arith.constant 0 : index
    %c0_72 = arith.constant 0 : index
    %60 = vector.load %arg2[%c1_70, %c0_71, %c0_72] : memref<2x1x4xf32, #tpu.memory_space<vmem>>, vector<1x1x4xf32>
    %61 = vector.shape_cast %60 : vector<1x1x4xf32> to vector<1x1x4xf32>
    %62 = vector.broadcast %61 : vector<1x1x4xf32> to vector<8x8x4xf32>
    %c0_73 = arith.constant 0 : index
    %c0_74 = arith.constant 0 : index
    %c0_75 = arith.constant 0 : index
    %c0_76 = arith.constant 0 : index
    %c0_77 = arith.constant 0 : index
    %63 = vector.load %arg3[%c0_73, %c0_74, %c0_75, %c0_76, %c0_77] : memref<1x9x2x9x8xf32, #tpu.memory_space<vmem>>, vector<1x8x1x8x4xf32>
    %64 = vector.shape_cast %63 : vector<1x8x1x8x4xf32> to vector<8x8x4xf32>
    %c1_78 = arith.constant 1 : index
    %c0_79 = arith.constant 0 : index
    %c0_80 = arith.constant 0 : index
    %65 = vector.load %arg1[%c1_78, %c0_79, %c0_80] : memref<2x9x4xf32, #tpu.memory_space<vmem>>, vector<1x1x4xf32>
    %66 = vector.broadcast %65 : vector<1x1x4xf32> to vector<8x8x4xf32>
    %67 = arith.mulf %64, %66 : vector<8x8x4xf32>
    %68 = arith.addf %62, %67 : vector<8x8x4xf32>
    %c0_81 = arith.constant 0 : index
    %c0_82 = arith.constant 0 : index
    %c0_83 = arith.constant 0 : index
    %c0_84 = arith.constant 0 : index
    %c4_85 = arith.constant 4 : index
    %69 = vector.load %arg3[%c0_81, %c0_82, %c0_83, %c0_84, %c4_85] : memref<1x9x2x9x8xf32, #tpu.memory_space<vmem>>, vector<1x8x1x8x4xf32>
    %70 = vector.shape_cast %69 : vector<1x8x1x8x4xf32> to vector<8x8x4xf32>
    %c1_86 = arith.constant 1 : index
    %c1_87 = arith.constant 1 : index
    %c0_88 = arith.constant 0 : index
    %71 = vector.load %arg1[%c1_86, %c1_87, %c0_88] : memref<2x9x4xf32, #tpu.memory_space<vmem>>, vector<1x1x4xf32>
    %72 = vector.broadcast %71 : vector<1x1x4xf32> to vector<8x8x4xf32>
    %73 = arith.mulf %70, %72 : vector<8x8x4xf32>
    %74 = arith.addf %68, %73 : vector<8x8x4xf32>
    %c0_89 = arith.constant 0 : index
    %c0_90 = arith.constant 0 : index
    %c0_91 = arith.constant 0 : index
    %c1_92 = arith.constant 1 : index
    %c0_93 = arith.constant 0 : index
    %75 = vector.load %arg3[%c0_89, %c0_90, %c0_91, %c1_92, %c0_93] : memref<1x9x2x9x8xf32, #tpu.memory_space<vmem>>, vector<1x8x1x8x4xf32>
    %76 = vector.shape_cast %75 : vector<1x8x1x8x4xf32> to vector<8x8x4xf32>
    %c1_94 = arith.constant 1 : index
    %c2_95 = arith.constant 2 : index
    %c0_96 = arith.constant 0 : index
    %77 = vector.load %arg1[%c1_94, %c2_95, %c0_96] : memref<2x9x4xf32, #tpu.memory_space<vmem>>, vector<1x1x4xf32>
    %78 = vector.broadcast %77 : vector<1x1x4xf32> to vector<8x8x4xf32>
    %79 = arith.mulf %76, %78 : vector<8x8x4xf32>
    %80 = arith.addf %74, %79 : vector<8x8x4xf32>
    %c0_97 = arith.constant 0 : index
    %c0_98 = arith.constant 0 : index
    %c1_99 = arith.constant 1 : index
    %c0_100 = arith.constant 0 : index
    %c0_101 = arith.constant 0 : index
    %81 = vector.load %arg3[%c0_97, %c0_98, %c1_99, %c0_100, %c0_101] : memref<1x9x2x9x8xf32, #tpu.memory_space<vmem>>, vector<1x8x1x8x4xf32>
    %82 = vector.shape_cast %81 : vector<1x8x1x8x4xf32> to vector<8x8x4xf32>
    %c1_102 = arith.constant 1 : index
    %c3_103 = arith.constant 3 : index
    %c0_104 = arith.constant 0 : index
    %83 = vector.load %arg1[%c1_102, %c3_103, %c0_104] : memref<2x9x4xf32, #tpu.memory_space<vmem>>, vector<1x1x4xf32>
    %84 = vector.broadcast %83 : vector<1x1x4xf32> to vector<8x8x4xf32>
    %85 = arith.mulf %82, %84 : vector<8x8x4xf32>
    %86 = arith.addf %80, %85 : vector<8x8x4xf32>
    %c0_105 = arith.constant 0 : index
    %c0_106 = arith.constant 0 : index
    %c1_107 = arith.constant 1 : index
    %c0_108 = arith.constant 0 : index
    %c4_109 = arith.constant 4 : index
    %87 = vector.load %arg3[%c0_105, %c0_106, %c1_107, %c0_108, %c4_109] : memref<1x9x2x9x8xf32, #tpu.memory_space<vmem>>, vector<1x8x1x8x4xf32>
    %88 = vector.shape_cast %87 : vector<1x8x1x8x4xf32> to vector<8x8x4xf32>
    %c1_110 = arith.constant 1 : index
    %c4_111 = arith.constant 4 : index
    %c0_112 = arith.constant 0 : index
    %89 = vector.load %arg1[%c1_110, %c4_111, %c0_112] : memref<2x9x4xf32, #tpu.memory_space<vmem>>, vector<1x1x4xf32>
    %90 = vector.broadcast %89 : vector<1x1x4xf32> to vector<8x8x4xf32>
    %91 = arith.mulf %88, %90 : vector<8x8x4xf32>
    %92 = arith.addf %86, %91 : vector<8x8x4xf32>
    %c0_113 = arith.constant 0 : index
    %c0_114 = arith.constant 0 : index
    %c1_115 = arith.constant 1 : index
    %c1_116 = arith.constant 1 : index
    %c0_117 = arith.constant 0 : index
    %93 = vector.load %arg3[%c0_113, %c0_114, %c1_115, %c1_116, %c0_117] : memref<1x9x2x9x8xf32, #tpu.memory_space<vmem>>, vector<1x8x1x8x4xf32>
    %94 = vector.shape_cast %93 : vector<1x8x1x8x4xf32> to vector<8x8x4xf32>
    %c1_118 = arith.constant 1 : index
    %c5_119 = arith.constant 5 : index
    %c0_120 = arith.constant 0 : index
    %95 = vector.load %arg1[%c1_118, %c5_119, %c0_120] : memref<2x9x4xf32, #tpu.memory_space<vmem>>, vector<1x1x4xf32>
    %96 = vector.broadcast %95 : vector<1x1x4xf32> to vector<8x8x4xf32>
    %97 = arith.mulf %94, %96 : vector<8x8x4xf32>
    %98 = arith.addf %92, %97 : vector<8x8x4xf32>
    %c0_121 = arith.constant 0 : index
    %c1_122 = arith.constant 1 : index
    %c0_123 = arith.constant 0 : index
    %c0_124 = arith.constant 0 : index
    %c0_125 = arith.constant 0 : index
    %99 = vector.load %arg3[%c0_121, %c1_122, %c0_123, %c0_124, %c0_125] : memref<1x9x2x9x8xf32, #tpu.memory_space<vmem>>, vector<1x8x1x8x4xf32>
    %100 = vector.shape_cast %99 : vector<1x8x1x8x4xf32> to vector<8x8x4xf32>
    %c1_126 = arith.constant 1 : index
    %c6_127 = arith.constant 6 : index
    %c0_128 = arith.constant 0 : index
    %101 = vector.load %arg1[%c1_126, %c6_127, %c0_128] : memref<2x9x4xf32, #tpu.memory_space<vmem>>, vector<1x1x4xf32>
    %102 = vector.broadcast %101 : vector<1x1x4xf32> to vector<8x8x4xf32>
    %103 = arith.mulf %100, %102 : vector<8x8x4xf32>
    %104 = arith.addf %98, %103 : vector<8x8x4xf32>
    %c0_129 = arith.constant 0 : index
    %c1_130 = arith.constant 1 : index
    %c0_131 = arith.constant 0 : index
    %c0_132 = arith.constant 0 : index
    %c4_133 = arith.constant 4 : index
    %105 = vector.load %arg3[%c0_129, %c1_130, %c0_131, %c0_132, %c4_133] : memref<1x9x2x9x8xf32, #tpu.memory_space<vmem>>, vector<1x8x1x8x4xf32>
    %106 = vector.shape_cast %105 : vector<1x8x1x8x4xf32> to vector<8x8x4xf32>
    %c1_134 = arith.constant 1 : index
    %c7_135 = arith.constant 7 : index
    %c0_136 = arith.constant 0 : index
    %107 = vector.load %arg1[%c1_134, %c7_135, %c0_136] : memref<2x9x4xf32, #tpu.memory_space<vmem>>, vector<1x1x4xf32>
    %108 = vector.broadcast %107 : vector<1x1x4xf32> to vector<8x8x4xf32>
    %109 = arith.mulf %106, %108 : vector<8x8x4xf32>
    %110 = arith.addf %104, %109 : vector<8x8x4xf32>
    %c0_137 = arith.constant 0 : index
    %c1_138 = arith.constant 1 : index
    %c0_139 = arith.constant 0 : index
    %c1_140 = arith.constant 1 : index
    %c0_141 = arith.constant 0 : index
    %111 = vector.load %arg3[%c0_137, %c1_138, %c0_139, %c1_140, %c0_141] : memref<1x9x2x9x8xf32, #tpu.memory_space<vmem>>, vector<1x8x1x8x4xf32>
    %112 = vector.shape_cast %111 : vector<1x8x1x8x4xf32> to vector<8x8x4xf32>
    %c1_142 = arith.constant 1 : index
    %c8_143 = arith.constant 8 : index
    %c0_144 = arith.constant 0 : index
    %113 = vector.load %arg1[%c1_142, %c8_143, %c0_144] : memref<2x9x4xf32, #tpu.memory_space<vmem>>, vector<1x1x4xf32>
    %114 = vector.broadcast %113 : vector<1x1x4xf32> to vector<8x8x4xf32>
    %115 = arith.mulf %112, %114 : vector<8x8x4xf32>
    %116 = arith.addf %110, %115 : vector<8x8x4xf32>
    %c0_145 = arith.constant 0 : index
    %c0_146 = arith.constant 0 : index
    %c0_147 = arith.constant 0 : index
    %c4_148 = arith.constant 4 : index
    %117 = vector.load %arg4[%c0_145, %c0_146, %c0_147, %c4_148] : memref<1x8x8x8xf32, #tpu.memory_space<vmem>>, vector<1x8x8x4xf32>
    %118 = vector.shape_cast %117 : vector<1x8x8x4xf32> to vector<8x8x4xf32>
    %119 = vector.shape_cast %116 : vector<8x8x4xf32> to vector<1x8x8x4xf32>
    tpu.vector_store %arg4[%c0_145, %c0_146, %c0_147, %c4_148], %119 {strides = array<i32>} : memref<1x8x8x8xf32, #tpu.memory_space<vmem>>, vector<1x8x8x4xf32>,
    return
  }
  func.func @transform_0(%arg0: i32) -> (i32, i32, i32) {
    %c0_i32 = arith.constant 0 : i32
    %c0_i32_0 = arith.constant 0 : i32
    %c0_i32_1 = arith.constant 0 : i32
    %c0_i32_2 = arith.constant 0 : i32
    return %c0_i32, %c0_i32_0, %c0_i32_1 : i32, i32, i32
  }
  func.func @transform_1(%arg0: i32) -> (i32, i32, i32) {
    %c0_i32 = arith.constant 0 : i32
    %c0_i32_0 = arith.constant 0 : i32
    %c0_i32_1 = arith.constant 0 : i32
    %c0_i32_2 = arith.constant 0 : i32
    return %c0_i32, %c0_i32_0, %c0_i32_1 : i32, i32, i32
  }
  func.func @transform_2(%arg0: i32) -> (i32, i32, i32, i32, i32) {
    %c0_i32 = arith.constant 0 : i32
    %c0_i32_0 = arith.constant 0 : i32
    %c0_i32_1 = arith.constant 0 : i32
    %c0_i32_2 = arith.constant 0 : i32
    %c0_i32_3 = arith.constant 0 : i32
    return %arg0, %c0_i32, %c0_i32_0, %c0_i32_1, %c0_i32_2 : i32, i32, i32, i32, i32
  }
  func.func @transform_3(%arg0: i32) -> (i32, i32, i32, i32) {
    %c0_i32 = arith.constant 0 : i32
    %c0_i32_0 = arith.constant 0 : i32
    %c0_i32_1 = arith.constant 0 : i32
    %c0_i32_2 = arith.constant 0 : i32
    return %arg0, %c0_i32, %c0_i32_0, %c0_i32_1 : i32, i32, i32, i32
  }
}

module attributes {stable_mosaic.version = 11 : i64} {
  func.func @_linear_kernel(%arg0: memref<2x4xf32, #tpu.memory_space<vmem>>, %arg1: memref<4x8xf32, #tpu.memory_space<vmem>>, %arg2: memref<1x8xf32, #tpu.memory_space<vmem>>, %arg3: memref<2x8xf32, #tpu.memory_space<vmem>>) attributes {dimension_semantics = [], scalar_prefetch = 0 : i64, scratch_operands = 0 : i64, tpu.core_type = #tpu.core_type<tc>} {
    %c0 = arith.constant 0 : index
    %c0_0 = arith.constant 0 : index
    %0 = vector.load %arg0[%c0, %c0_0] : memref<2x4xf32, #tpu.memory_space<vmem>>, vector<2x4xf32>
    %c0_1 = arith.constant 0 : index
    %c0_2 = arith.constant 0 : index
    %1 = vector.load %arg1[%c0_1, %c0_2] : memref<4x8xf32, #tpu.memory_space<vmem>>, vector<4x8xf32>
    %cst = arith.constant dense<0.000000e+00> : vector<2x8xf32>
    %2 = tpu.matmul %0, %1, %cst {dimension_numbers = #tpu.dot_dimension_numbers<[1], [0], [0], [1], [0, 0, 1, 1], [], []>} : vector<2x4xf32>, vector<4x8xf32>, vector<2x8xf32> -> vector<2x8xf32>
    %c0_3 = arith.constant 0 : index
    %c0_4 = arith.constant 0 : index
    %3 = vector.load %arg2[%c0_3, %c0_4] : memref<1x8xf32, #tpu.memory_space<vmem>>, vector<1x8xf32>
    %4 = vector.broadcast %3 : vector<1x8xf32> to vector<2x8xf32>
    %5 = arith.addf %2, %4 : vector<2x8xf32>
    %c0_5 = arith.constant 0 : index
    %c0_6 = arith.constant 0 : index
    %6 = vector.load %arg3[%c0_5, %c0_6] : memref<2x8xf32, #tpu.memory_space<vmem>>, vector<2x8xf32>
    tpu.vector_store %arg3[%c0_5, %c0_6], %5 {strides = array<i32>} : memref<2x8xf32, #tpu.memory_space<vmem>>, vector<2x8xf32>,
    return
  }
}

</mosaic_0001>

<bundles_post_ra>
// kernel: conv_head_pooling_fwd.3
= control target key start
LH: loop header
LB: loop body
LE: loop exit
PB: predicated region body
PF: predicated region fallthrough
CT: control target
= control target key end

     0   :  { %vm25_vm0 = vcmask 1043456   ;;  %vm21_vm1 = vcmask 31744   ;;  %s130_s0 = inlined_call_operand.vmem [shape: f32[2,4], index: 0, kind: input, shape index: {}]   ;;  %s131_s1 = inlined_call_operand.vmem [shape: f32[4,8], index: 1, kind: input, shape index: {}]   ;;  %s132_s2 = inlined_call_operand.vmem [shape: f32[1,8], index: 2, kind: input, shape index: {}]   ;;  %s133_s3 = inlined_call_operand.hbm [shape: f32[2,8], index: 3, kind: output, shape index: {}]  }
   0x1   :  { %v16_v0 = vld [vmem:[%s131_s1] sm:$0xf] }
   0x2   :  { %v15_v1 = vld [vmem:[%s130_s0] sm:$0x3]  ;;  %67 = vmatpush.msk.msra.mxu0 %vm25_vm0, %v16_v0 }
   0x3   :  { %8 = vsyncpa [#allocation3], 0  ;;  %68 = vmatmul.msk.f32.vlgmr.msra.gmra.mxu0 %vm21_vm1, %v15_v1  ;;  %v70_v2 = vld [vmem:[%s132_s2] ss:$0 sm:$0xff]  ;;  %s97_s18 = smov [#allocation2]   ;;  %s58_s22 = sshll.u32 %s133_s3, 4  ;;  %s59_s22 = int_to_ptr.hbm [resolvable:$true] %s58_s22 }
   0x4   :  { %s56_s19 = sshll.u32 %s97_s18, 4  ;;  %vm49_vm2 = vcmask 58368   ;;  %s57_s19 = int_to_ptr.vmem [resolvable:$true] %s56_s19 }
  0x80   :  { %v46_v3 = vpop.f32.mrf.mxu0 }
  0x81   :  { %v47_v4 = vadd.f32 %v70_v2, %v46_v3 }
  0x83   :  { %50 = vst.msk [vmem:[#allocation2] sm:$0x3] %vm49_vm2, %v47_v4 }
  0x84   :  { %61 = dma.vmem_to_hbm [thread:$0]  %s57_s19, 32, %s59_s22, [#allocation3]  }
  0x85   :  { %95 = dma.done.wait [#allocation3], 32  }
  0x86   :  { %96 = vsyncadd [#allocation3], 4294967264 }
  0x87   :  { %66 = vsyncpa [#allocation3], 1 }

// kernel: conv_head_pooling_fwd.2
= control target key start
LH: loop header
LB: loop body
LE: loop exit
PB: predicated region body
PF: predicated region fallthrough
CT: control target
= control target key end

     0   :  { %s1070_s12 = smov 0   ;;  %s1665_s0 = inlined_call_operand.vmem [shape: f32[2,9,4], index: 0, kind: input, shape index: {}]   ;;  %s1666_s1 = inlined_call_operand.vmem [shape: f32[2,1,4], index: 1, kind: input, shape index: {}]   ;;  %s1667_s2 = inlined_call_operand.vmem [shape: f32[2,9,2,9,8], index: 2, kind: input, shape index: {}]   ;;  %s1668_s3 = inlined_call_operand.vmem [shape: f32[2,8,8,8], index: 3, kind: output, shape index: {}]  }
   0x1 LB: > { %s924_s13 = sadd.s32 4294967295, %s1046_s12   ;;  %p928_p0 = scmp.ge.s32.totalorder %s1046_s12, 1  ;;  %s1046_s12 = sphi %s1070_s12, %s13_s12  }
   0x2   : > { %p137_p1 = scmp.lt.s32.totalorder %s1046_s12, 3 }
   0x4   : > { %p138_p2 = pnand %p928_p0, %p137_p1 }
   0x5   : > { %s1048_s16 = smov (!%p138_p2), 4   ;;  %p161_p3 = scmp.lt.s32.totalorder (!%p138_p2), %s924_s13, 1 }
   0x6   : > { %141 = sbr.rel (%p138_p2) target bundleno = 492 (0x1ec), region = 32  ;;  %s1049_s4 = smov (!%p138_p2), 124  }
   0xb   : > { %v1020_v0 = vld [vmem:[%s1665_s0 + $0x1] ss:$0 sm:$0xff]  ;;  %v1022_v1 = vld [vmem:[%s1665_s0 + $0x11] ss:$0 sm:$0xff]  ;;  %v1024_v2 = vld [vmem:[%s1665_s0 + $0x14] ss:$0 sm:$0xff] }
   0xc   : > { %204 = vrot.lane.b32.xlu0 %v1020_v0, %s1048_s16  ;;  %539 = vrot.lane.b32.xlu2 %v1022_v1, %s1048_s16  ;;  %v1021_v3 = vld [vmem:[%s1665_s0 + $0x4] ss:$0 sm:$0xff]  ;;  %v1023_v4 = vld [vmem:[%s1665_s0 + $0x7] ss:$0 sm:$0xff]  ;;  %s1670_s13 = smov (!%p161_p3, %s924_s13), 1  ;;  %vm495_vm0 = vcmask 31744  }
   0xd   : > { %645 = vrot.lane.b32.xlu1 %v1024_v2, %s1048_s16  ;;  %v1025_v5 = vld [vmem:[%s1665_s0 + $0x17] ss:$0 sm:$0xff]  ;;  %s1009_s27 = smul.u32 288, %s1670_s13  ;;  %v1227_v61 = vld [vmem:[%s1665_s0] ss:$0 sm:$0xff]  ;;  %s1008_s22 = sshll.u32 %s1670_s13, 6 }
   0xe   : > { %v1235_v62 = vld [vmem:[%s1666_s1] ss:$0 sm:$0xff]  ;;  %v1244_v2 = vld [vmem:[%s1665_s0 + $0x2] ss:$0 sm:$0xff]  ;;  %s1356_s25 = scalar_lea.vmem %s1668_s3, %s1008_s22  ;;  %vm860_vm1 = vcmask 64544  }
   0xf   : > { %s1108_s30 = scalar_lea.vmem %s1667_s2, %s1009_s27 }
  0x10   : > { %v1111_v6 = vld [vmem:[%s1108_s30 + $0x60] sm:$0xff]  ;;  %v1141_v20 = vld [vmem:[%s1108_s30 + $0x50] sm:$0xff] }
  0x11   : > { %v1114_v7 = vld [vmem:[%s1108_s30 + $0x20] sm:$0xff]  ;;  %v1156_v26 = vld [vmem:[%s1108_s30 + $0x30] sm:$0xff]  ;;  %v188_v63 = vmul.f32 %v1227_v61, %v1111_v6 }
  0x12   : > { %v1117_v8 = vld [vmem:[%s1108_s30] sm:$0xff]  ;;  %v1159_v27 = vld [vmem:[%s1108_s30 + $0x10] sm:$0xff] }
  0x13   : > { %v1126_v13 = vld [vmem:[%s1108_s30 + $0x80] sm:$0xff]  ;;  %v1162_v28 = vld [vmem:[%s1108_s30 + $0xb0] sm:$0xff] }
  0x14   : > { %311 = vrot.lane.b32.xlu0 %v1021_v3, %s1048_s16  ;;  %418 = vrot.lane.b32.xlu2 %v1023_v4, %s1048_s16  ;;  %v1129_v14 = vld [vmem:[%s1108_s30 + $0x40] sm:$0xff]  ;;  %v1171_v33 = vld [vmem:[%s1108_s30 + $0x90] sm:$0xff] }
  0x15   : > { %v1132_v15 = vld [vmem:[%s1108_s30 + $0xa0] sm:$0xff]  ;;  %v1174_v34 = vld [vmem:[%s1108_s30 + $0x70] sm:$0xff] }
  0x16   : > { %v1144_v21 = vld [vmem:[%s1108_s30 + $0xe0] sm:$0xff]  ;;  %v1177_v35 = vld [vmem:[%s1108_s30 + $0xf0] sm:$0xff] }
  0x17   : > { %v1147_v22 = vld [vmem:[%s1108_s30 + $0xc0] sm:$0xff]  ;;  %v1186_v40 = vld [vmem:[%s1108_s30 + $0xd0] sm:$0xff] }
  0x18   : > { %v1201_v47 = vld [vmem:[%s1108_s30 + $0x100] sm:$0xff] }
  0x19   : > { %v1248_v4 = vld [vmem:[%s1108_s30 + $0x61] sm:$0xff] }
  0x1c   : > { %751 = vrot.lane.b32.xlu0 %v1025_v5, %s1048_s16  ;;  %v1253_v5 = vld [vmem:[%s1665_s0 + $0x3] ss:$0 sm:$0xff] }
  0x66   : > { %v540_v32 = vpop.permute.xlu2 %539 }
  0x67   : > { %v542_v50 = vmul.f32 %v540_v32, %v1117_v8  ;;  %v544_v51 = vmul.f32 %v540_v32, %v1129_v14  ;;  %v545_v53 = vmul.f32 %v540_v32, %v1111_v6  ;;  %v547_v54 = vmul.f32 %v540_v32, %v1132_v15 }
  0x68   : > { %v543_v55 = vmul.f32 %v540_v32, %v1114_v7  ;;  %v548_v56 = vmul.f32 %v540_v32, %v1147_v22  ;;  %v546_v60 = vmul.f32 %v540_v32, %v1126_v13  ;;  %v549_v3 = vmul.f32 %v540_v32, %v1144_v21 }
  0x6e   : > { %v419_v39 = vpop.permute.xlu2 %418 }
  0x6f   : > { %v422_v41 = vmul.f32 %v419_v39, %v1129_v14  ;;  %v423_v42 = vmul.f32 %v419_v39, %v1111_v6  ;;  %v425_v44 = vmul.f32 %v419_v39, %v1132_v15  ;;  %v421_v45 = vmul.f32 %v419_v39, %v1114_v7 }
  0x70   : > { %v426_v46 = vmul.f32 %v419_v39, %v1147_v22  ;;  %v428_v48 = vmul.f32 %v1201_v47, %v419_v39  ;;  %v424_v49 = vmul.f32 %v419_v39, %v1126_v13  ;;  %v427_v52 = vmul.f32 %v419_v39, %v1144_v21 }
  0x7e   : > { %v205_v9 = vpop.permute.xlu0 %204 }
  0x7f   : > { %v210_v10 = vmul.f32 %v205_v9, %v1111_v6  ;;  %v208_v11 = vmul.f32 %v205_v9, %v1114_v7  ;;  %v207_v12 = vmul.f32 %v205_v9, %v1117_v8  ;;  %v211_v16 = vmul.f32 %v205_v9, %v1126_v13  ;;  %v646_v57 = vpop.permute.xlu1 %645 }
  0x80   : > { %v209_v17 = vmul.f32 %v205_v9, %v1129_v14  ;;  %v212_v18 = vmul.f32 %v205_v9, %v1132_v15  ;;  %v214_v24 = vmul.f32 %v205_v9, %v1144_v21  ;;  %v213_v25 = vmul.f32 %v205_v9, %v1147_v22 }
  0x81   : > { %229 = vrot.lane.b32.xlu2 %v210_v10, %s1049_s4  ;;  %225 = vrot.lane.b32.xlu1 %v208_v11, %s1049_s4  ;;  %v648_v58 = vmul.f32 %v1159_v27, %v646_v57  ;;  %v649_v59 = vmul.f32 %v1156_v26, %v646_v57  ;;  %v651_v0 = vmul.f32 %v1174_v34, %v646_v57 }
  0x82   : > { %223 = vrot.lane.b32.xlu0 %v207_v12, %s1049_s4  ;;  %v652_v1 = vmul.f32 %v1171_v33, %v646_v57  ;;  %v196_v9 = vadd.f32 %v1235_v62, %v188_v63  ;;  %v268_v10 = vmul.f32 %v1244_v2, %v1248_v4  ;;  %v653_v32 = vmul.f32 %v1162_v28, %v646_v57 }
  0x86   : > { %v312_v19 = vpop.permute.xlu0 %311 }
  0x87   : > { %v316_v23 = vmul.f32 %v1141_v20, %v312_v19  ;;  %v315_v29 = vmul.f32 %v1156_v26, %v312_v19  ;;  %v314_v30 = vmul.f32 %v1159_v27, %v312_v19  ;;  %v319_v31 = vmul.f32 %v1162_v28, %v312_v19 }
  0x88   : > { %v318_v36 = vmul.f32 %v1171_v33, %v312_v19  ;;  %v317_v37 = vmul.f32 %v1174_v34, %v312_v19  ;;  %v321_v38 = vmul.f32 %v1177_v35, %v312_v19  ;;  %v320_v43 = vmul.f32 %v1186_v40, %v312_v19 }
  0x89   : > { %231 = vrot.lane.b32.xlu2 %v211_v16, %s1049_s4  ;;  %227 = vrot.lane.b32.xlu1 %v209_v17, %s1049_s4  ;;  %v295_v16 = vmul.f32 %v1253_v5, %v1174_v34  ;;  %v654_v17 = vmul.f32 %v1186_v40, %v646_v57 }
  0x8a   : > { %233 = vrot.lane.b32.xlu0 %v212_v18, %s1049_s4  ;;  %v650_v18 = vmul.f32 %v1141_v20, %v646_v57 }
  0x91   : > { %237 = vrot.lane.b32.xlu2 %v214_v24, %s1049_s4  ;;  %235 = vrot.lane.b32.xlu1 %v213_v25, %s1049_s4  ;;  %v752_v25 = vpop.permute.xlu0 %751 }
  0x92   : > { %334 = vrot.lane.b32.xlu0 %v316_v23, %s1049_s4  ;;  %v655_v23 = vmul.f32 %v1177_v35, %v646_v57  ;;  %v754_v39 = vmul.f32 %v752_v25, %v1114_v7  ;;  %v757_v57 = vmul.f32 %v752_v25, %v1126_v13 }
  0x99   : > { %332 = vrot.lane.b32.xlu2 %v315_v29, %s1049_s4  ;;  %330 = vrot.lane.b32.xlu1 %v314_v30, %s1049_s4  ;;  %v755_v30 = vmul.f32 %v752_v25, %v1129_v14 }
  0x9a   : > { %340 = vrot.lane.b32.xlu0 %v319_v31, %s1049_s4  ;;  %v756_v31 = vmul.f32 %v752_v25, %v1111_v6 }
  0xa1   : > { %338 = vrot.lane.b32.xlu2 %v318_v36, %s1049_s4  ;;  %336 = vrot.lane.b32.xlu1 %v317_v37, %s1049_s4  ;;  %v186_v37 = vmul.f32 %v1227_v61, %v1114_v7 }
  0xa2   : > { %344 = vrot.lane.b32.xlu0 %v321_v38, %s1049_s4  ;;  %v758_v38 = vmul.f32 %v752_v25, %v1132_v15 }
  0xa9   : > { %439 = vrot.lane.b32.xlu2 %v422_v41, %s1049_s4  ;;  %342 = vrot.lane.b32.xlu1 %v320_v43, %s1049_s4  ;;  %v759_v41 = vmul.f32 %v752_v25, %v1147_v22  ;;  %v189_v43 = vmul.f32 %v1227_v61, %v1126_v13 }
  0xaa   : > { %441 = vrot.lane.b32.xlu0 %v423_v42, %s1049_s4  ;;  %v1285_v42 = vld [vmem:[%s1108_s30 + $0x21] sm:$0xff] }
  0xb1   : > { %445 = vrot.lane.b32.xlu2 %v425_v44, %s1049_s4  ;;  %437 = vrot.lane.b32.xlu1 %v421_v45, %s1049_s4  ;;  %v194_v44 = vadd.f32 %v1235_v62, %v186_v37  ;;  %v266_v45 = vmul.f32 %v1244_v2, %v1285_v42 }
  0xb2   : > { %447 = vrot.lane.b32.xlu0 %v426_v46, %s1049_s4 }
  0xb9   : > { %451 = vrot.lane.b32.xlu2 %v428_v48, %s1049_s4  ;;  %443 = vrot.lane.b32.xlu1 %v424_v49, %s1049_s4  ;;  %v293_v49 = vmul.f32 %v1253_v5, %v1156_v26 }
  0xba   : > { %558 = vrot.lane.b32.xlu0 %v542_v50, %s1049_s4  ;;  %v197_v50 = vadd.f32 %v1235_v62, %v189_v43 }
  0xc1   : > { %562 = vrot.lane.b32.xlu2 %v544_v51, %s1049_s4  ;;  %449 = vrot.lane.b32.xlu1 %v427_v52, %s1049_s4 }
  0xc2   : > { %564 = vrot.lane.b32.xlu0 %v545_v53, %s1049_s4  ;;  %v1301_v53 = vld [vmem:[%s1108_s30 + $0x81] sm:$0xff] }
  0xc9   : > { %568 = vrot.lane.b32.xlu2 %v547_v54, %s1049_s4  ;;  %560 = vrot.lane.b32.xlu1 %v543_v55, %s1049_s4  ;;  %v1306_v55 = vld [vmem:[%s1665_s0 + $0x5] ss:$0 sm:$0xff] }
  0xca   : > { %570 = vrot.lane.b32.xlu0 %v548_v56, %s1049_s4  ;;  %v761_v56 = vmul.f32 %v1201_v47, %v752_v25 }
  0xd1   : > { %664 = vrot.lane.b32.xlu2 %v648_v58, %s1049_s4  ;;  %566 = vrot.lane.b32.xlu1 %v546_v60, %s1049_s4  ;;  %v1311_v58 = vld [vmem:[%s1108_s30 + $0x31] sm:$0xff] }
  0xd2   : > { %666 = vrot.lane.b32.xlu0 %v649_v59, %s1049_s4  ;;  %v269_v59 = vmul.f32 %v1244_v2, %v1301_v53 }
  0xd9   : > { %670 = vrot.lane.b32.xlu2 %v651_v0, %s1049_s4  ;;  %572 = vrot.lane.b32.xlu1 %v549_v3, %s1049_s4  ;;  %v1320_v0 = vld [vmem:[%s1665_s0 + $0x6] ss:$0 sm:$0xff] }
  0xda   : > { %672 = vrot.lane.b32.xlu0 %v652_v1, %s1049_s4  ;;  %v373_v1 = vmul.f32 %v1306_v55, %v1311_v58 }
  0xdb   : > { %v230_v11 = vpop.permute.xlu2 %229 }
  0xdc   : > { %v250_v12 = vadd.f32 %v230_v11, %v196_v9 }
  0xde   : > { %v276_v19 = vadd.f32 %v268_v10, %v250_v12  ;;  %v296_v12 = vmul.f32 %v1253_v5, %v1171_v33 }
  0xe0   : > { %v1266_v24 = vadd.f32 %v295_v16, %v276_v19 }
  0xe1   : > { %676 = vrot.lane.b32.xlu2 %v654_v17, %s1049_s4  ;;  %668 = vrot.lane.b32.xlu1 %v650_v18, %s1049_s4  ;;  %v400_v17 = vmul.f32 %v1320_v0, %v1129_v14  ;;  %v1331_v18 = vld [vmem:[%s1665_s0 + $0x8] ss:$0 sm:$0xff] }
  0xe2   : > { %678 = vrot.lane.b32.xlu0 %v655_v23, %s1049_s4  ;;  %v1334_v23 = vld [vmem:[%s1108_s30 + $0x91] sm:$0xff] }
  0xe3   : > { %v232_v29 = vpop.permute.xlu2 %231  ;;  %v376_v37 = vmul.f32 %v1306_v55, %v1334_v23 }
  0xe4   : > { %v251_v60 = vadd.f32 %v232_v29, %v197_v50  ;;  %v760_v29 = vmul.f32 %v752_v25, %v1144_v21  ;;  %v192_v25 = vmul.f32 %v1227_v61, %v1144_v21 }
  0xe6   : > { %v277_v11 = vadd.f32 %v269_v59, %v251_v60 }
  0xe9   : > { %772 = vrot.lane.b32.xlu2 %v755_v30, %s1049_s4  ;;  %674 = vrot.lane.b32.xlu1 %v653_v32, %s1049_s4  ;;  %v304_v30 = vadd.f32 %v296_v12, %v277_v11  ;;  %v1340_v32 = vld [vmem:[%s1108_s30 + $0x41] sm:$0xff] }
  0xea   : > { %774 = vrot.lane.b32.xlu0 %v756_v31, %s1049_s4  ;;  %v187_v31 = vmul.f32 %v1227_v61, %v1129_v14  ;;  %v267_v59 = vmul.f32 %v1244_v2, %v1340_v32 }
  0xeb   : > { %v1277_v36 = vpop.permute.xlu2 %237 }
  0xf1   : > { %778 = vrot.lane.b32.xlu2 %v758_v38, %s1049_s4  ;;  %770 = vrot.lane.b32.xlu1 %v754_v39, %s1049_s4  ;;  %v480_v39 = vmul.f32 %v1331_v18, %v1340_v32 }
  0xf2   : > { %780 = vrot.lane.b32.xlu0 %v759_v41, %s1049_s4 }
  0xf3   : > { %v333_v46 = vpop.permute.xlu2 %332  ;;  %v226_v48 = vpop.permute.xlu1 %225 }
  0xf4   : > { %v248_v51 = vadd.f32 %v226_v48, %v194_v44  ;;  %v1298_v52 = vpop.permute.xlu0 %223  ;;  %v195_v48 = vadd.f32 %v1235_v62, %v187_v31  ;;  %v1382_v31 = vld [vmem:[%s1108_s30 + $0x1] sm:$0xff] }
  0xf6   : > { %v274_v54 = vadd.f32 %v266_v45, %v248_v51  ;;  %v403_v51 = vmul.f32 %v1320_v0, %v1132_v15 }
  0xf8   : > { %v301_v63 = vadd.f32 %v293_v49, %v274_v54  ;;  %v200_v54 = vadd.f32 %v1235_v62, %v192_v25 }
  0xf9   : > { %784 = vrot.lane.b32.xlu2 %v761_v56, %s1049_s4  ;;  %776 = vrot.lane.b32.xlu1 %v757_v57, %s1049_s4  ;;  %v1362_v56 = vld [vmem:[%s1108_s30 + $0xe1] sm:$0xff]  ;;  %v185_v57 = vmul.f32 %v1227_v61, %v1117_v8 }
  0xfa   : > { %v355_v3 = vadd.f32 %v333_v46, %v301_v63  ;;  %v190_v63 = vmul.f32 %v1227_v61, %v1132_v15  ;;  %v272_v11 = vmul.f32 %v1244_v2, %v1362_v56  ;;  %v254_v12 = vadd.f32 %v1277_v36, %v200_v54 }
  0xfb   : > { %v339_v9 = vpop.permute.xlu2 %338  ;;  %v228_v10 = vpop.permute.xlu1 %227  ;;  %v299_v36 = vmul.f32 %v1253_v5, %v1177_v35 }
  0xfc   : > { %v234_v16 = vpop.permute.xlu0 %233  ;;  %v381_v19 = vadd.f32 %v373_v1, %v355_v3  ;;  %v358_v38 = vadd.f32 %v339_v9, %v304_v30  ;;  %v249_v60 = vadd.f32 %v228_v10, %v195_v48  ;;  %v1373_v1 = vld [vmem:[%s1108_s30 + $0xa1] sm:$0xff]  ;;  %v193_v10 = vadd.f32 %v1235_v62, %v185_v57  ;;  %v1393_v48 = vld [vmem:[%s1108_s30 + $0x51] sm:$0xff] }
  0xfd   : > { %v483_v9 = vmul.f32 %v1331_v18, %v1373_v1  ;;  %v280_v25 = vadd.f32 %v272_v11, %v254_v12  ;;  %v374_v57 = vmul.f32 %v1306_v55, %v1393_v48  ;;  %v292_v11 = vmul.f32 %v1253_v5, %v1159_v27 }
  0xfe   : > { %v408_v41 = vadd.f32 %v400_v17, %v381_v19  ;;  %v384_v49 = vadd.f32 %v376_v37, %v358_v38  ;;  %v275_v37 = vadd.f32 %v267_v59, %v249_v60  ;;  %v198_v38 = vadd.f32 %v1235_v62, %v190_v63 }
  0xff   : > { %v307_v63 = vadd.f32 %v299_v36, %v280_v25  ;;  %v401_v25 = vmul.f32 %v1320_v0, %v1111_v6  ;;  %v191_v36 = vmul.f32 %v1227_v61, %v1147_v22 }
 0x100   : > { %v411_v3 = vadd.f32 %v403_v51, %v384_v49  ;;  %v1398_v49 = vld [vmem:[%s1108_s30 + $0xf1] sm:$0xff]  ;;  %v252_v51 = vadd.f32 %v234_v16, %v198_v38  ;;  %v406_v16 = vmul.f32 %v1320_v0, %v1201_v47 }
 0x101   : > { %782 = vrot.lane.b32.xlu1 %v760_v29, %s1049_s4  ;;  %v1416_v38 = vld [vmem:[%s1108_s30 + $0x11] sm:$0xff] }
 0x103   : > { %v440_v43 = vpop.permute.xlu2 %439  ;;  %v1350_v44 = vpop.permute.xlu1 %235 }
 0x104   : > { %v462_v45 = vadd.f32 %v440_v43, %v408_v41  ;;  %v335_v46 = vpop.permute.xlu0 %334  ;;  %v265_v43 = vmul.f32 %v1244_v2, %v1382_v31 }
 0x106   : > { %v488_v50 = vadd.f32 %v480_v39, %v462_v45  ;;  %v294_v39 = vmul.f32 %v1253_v5, %v1141_v20  ;;  %v247_v45 = vadd.f32 %v1298_v52, %v193_v10  ;;  %v297_v10 = vmul.f32 %v1253_v5, %v1162_v28 }
 0x108   : > { %497 = vst.msk [vmem:[%s1356_s25 + $0x8] sm:$0xff] %vm495_vm0, %v488_v50  ;;  %v270_v50 = vmul.f32 %v1244_v2, %v1373_v1  ;;  %v302_v54 = vadd.f32 %v294_v39, %v275_v37  ;;  %v1419_v39 = vld [vmem:[%s1108_s30 + $0xb1] sm:$0xff] }
 0x10a   : > { %v356_v59 = vadd.f32 %v335_v46, %v302_v54  ;;  %v1413_v46 = vld [vmem:[%s1108_s30 + $0x101] sm:$0xff]  ;;  %v372_v54 = vmul.f32 %v1306_v55, %v1416_v38 }
 0x10b   : > { %v446_v17 = vpop.permute.xlu2 %445  ;;  %v331_v19 = vpop.permute.xlu1 %330 }
 0x10c   : > { %v465_v29 = vadd.f32 %v446_v17, %v411_v3  ;;  %v341_v30 = vpop.permute.xlu0 %340  ;;  %v379_v3 = vmul.f32 %v1306_v55, %v1398_v49  ;;  %v278_v17 = vadd.f32 %v270_v50, %v252_v51  ;;  %v382_v37 = vadd.f32 %v374_v57, %v356_v59 }
 0x10d   : > { %v486_v50 = vmul.f32 %v1331_v18, %v1413_v46  ;;  %v377_v59 = vmul.f32 %v1306_v55, %v1419_v39 }
 0x10e   : > { %v491_v41 = vadd.f32 %v483_v9, %v465_v29  ;;  %v273_v9 = vadd.f32 %v265_v43, %v247_v45  ;;  %v305_v45 = vadd.f32 %v297_v10, %v278_v17  ;;  %v1437_v10 = vld [vmem:[%s1108_s30 + $0xc1] sm:$0xff] }
 0x110   : > { %500 = vst.msk [vmem:[%s1356_s25 + $0x20] sm:$0xff] %vm495_vm0, %v491_v41  ;;  %v300_v43 = vadd.f32 %v292_v11, %v273_v9  ;;  %v409_v9 = vadd.f32 %v401_v25, %v382_v37  ;;  %v481_v11 = vmul.f32 %v1331_v18, %v1248_v4  ;;  %v404_v25 = vmul.f32 %v1320_v0, %v1147_v22 }
 0x112   : > { %v354_v57 = vadd.f32 %v331_v19, %v300_v43  ;;  %v1442_v43 = vld [vmem:[%s1108_s30 + $0x71] sm:$0xff] }
 0x113   : > { %v452_v60 = vpop.permute.xlu2 %451  ;;  %v337_v52 = vpop.permute.xlu1 %336 }
 0x114   : > { %v345_v12 = vpop.permute.xlu0 %344 }
 0x115   : > { %v361_v29 = vadd.f32 %v345_v12, %v307_v63  ;;  %v359_v63 = vadd.f32 %v341_v30, %v305_v45  ;;  %v399_v30 = vmul.f32 %v1320_v0, %v1114_v7  ;;  %v375_v45 = vmul.f32 %v1306_v55, %v1442_v43 }
 0x117   : > { %v387_v41 = vadd.f32 %v379_v3, %v361_v29 }
 0x119   : > { %v414_v51 = vadd.f32 %v406_v16, %v387_v41  ;;  %v199_v16 = vadd.f32 %v1235_v62, %v191_v36  ;;  %v380_v41 = vadd.f32 %v372_v54, %v354_v57  ;;  %v271_v62 = vmul.f32 %v1244_v2, %v1437_v10  ;;  %v1461_v57 = vld [vmem:[%s1665_s0 + $0x10] ss:$0 sm:$0xff] }
 0x11b   : > { %v468_v3 = vadd.f32 %v452_v60, %v414_v51  ;;  %v1431_v12 = vpop.permute.xlu2 %562  ;;  %v343_v61 = vpop.permute.xlu1 %342  ;;  %v385_v60 = vadd.f32 %v377_v59, %v359_v63  ;;  %v253_v36 = vadd.f32 %v1350_v44, %v199_v16  ;;  %v479_v51 = vmul.f32 %v1331_v18, %v1285_v42 }
 0x11c   : > { %v442_v17 = vpop.permute.xlu0 %441  ;;  %v407_v54 = vadd.f32 %v399_v30, %v380_v41  ;;  %v484_v63 = vmul.f32 %v1331_v18, %v1437_v10  ;;  %v520_v16 = vmul.f32 %v1461_v57, %v1117_v8  ;;  %v1476_v41 = vld [vmem:[%s1666_s1 + $0x1] ss:$0 sm:$0xff]  ;;  %v1479_v30 = vld [vmem:[%s1108_s30 + $0xd1] sm:$0xff] }
 0x11d   : > { %v494_v19 = vadd.f32 %v486_v50, %v468_v3  ;;  %v463_v29 = vadd.f32 %v442_v17, %v409_v9  ;;  %v357_v50 = vadd.f32 %v337_v52, %v1266_v24  ;;  %v412_v59 = vadd.f32 %v404_v25, %v385_v60  ;;  %v1486_v8 = vld [vmem:[%s1665_s0 + $0x12] ss:$0 sm:$0xff] }
 0x11e   : > { %v279_v24 = vadd.f32 %v271_v62, %v253_v36  ;;  %v298_v52 = vmul.f32 %v1253_v5, %v1186_v40  ;;  %v378_v25 = vmul.f32 %v1306_v55, %v1479_v30 }
 0x11f   : > { %503 = vst.msk [vmem:[%s1356_s25 + $0x38] sm:$0xff] %vm495_vm0, %v494_v19  ;;  %v489_v37 = vadd.f32 %v481_v11, %v463_v29  ;;  %v383_v17 = vadd.f32 %v375_v45, %v357_v50  ;;  %v402_v29 = vmul.f32 %v1320_v0, %v1126_v13  ;;  %v482_v45 = vmul.f32 %v1331_v18, %v1301_v53  ;;  %v1498_v50 = vld [vmem:[%s1665_s0 + $0x13] ss:$0 sm:$0xff] }
 0x120   : > { %v306_v5 = vadd.f32 %v298_v52, %v279_v24  ;;  %v626_v55 = vmul.f32 %v1498_v50, %v1159_v27  ;;  %v523_v24 = vmul.f32 %v1461_v57, %v1111_v6  ;;  %v1509_v52 = vld [vmem:[%s1665_s0 + $0x15] ss:$0 sm:$0xff] }
 0x121   : > { %498 = vst.msk [vmem:[%s1356_s25 + $0x10] sm:$0xff] %vm495_vm0, %v489_v37  ;;  %v528_v37 = vadd.f32 %v1476_v41, %v520_v16  ;;  %v410_v36 = vadd.f32 %v402_v29, %v383_v17  ;;  %v706_v17 = vmul.f32 %v1509_v52, %v1416_v38  ;;  %v485_v29 = vmul.f32 %v1331_v18, %v1362_v56 }
 0x122   : > { %v360_v62 = vadd.f32 %v343_v61, %v306_v5  ;;  %v531_v27 = vadd.f32 %v1476_v41, %v523_v24 }
 0x123   : > { %v1463_v2 = vpop.permute.xlu2 %568  ;;  %v438_v44 = vpop.permute.xlu1 %437 }
 0x124   : > { %v461_v3 = vadd.f32 %v438_v44, %v407_v54  ;;  %v448_v9 = vpop.permute.xlu0 %447  ;;  %v600_v44 = vmul.f32 %v1486_v8, %v1382_v31 }
 0x125   : > { %v466_v11 = vadd.f32 %v448_v9, %v412_v59 }
 0x126   : > { %v487_v19 = vadd.f32 %v479_v51, %v461_v3  ;;  %v386_v3 = vadd.f32 %v378_v25, %v360_v62 }
 0x127   : > { %v492_v60 = vadd.f32 %v484_v63, %v466_v11  ;;  %v405_v11 = vmul.f32 %v1320_v0, %v1144_v21 }
 0x128   : > { %496 = vst.msk [vmem:[%s1356_s25] sm:$0xff] %vm495_vm0, %v487_v19 }
 0x129   : > { %501 = vst.msk [vmem:[%s1356_s25 + $0x28] sm:$0xff] %vm495_vm0, %v492_v60  ;;  %v413_v19 = vadd.f32 %v405_v11, %v386_v3  ;;  %v524_v11 = vmul.f32 %v1461_v57, %v1126_v13 }
 0x12b   : > { %v665_v51 = vpop.permute.xlu2 %664  ;;  %v444_v54 = vpop.permute.xlu1 %443 }
 0x12c   : > { %v464_v59 = vadd.f32 %v444_v54, %v410_v36  ;;  %v559_v63 = vpop.permute.xlu0 %558  ;;  %v521_v36 = vmul.f32 %v1461_v57, %v1114_v7 }
 0x12d   : > { %v582_v61 = vadd.f32 %v559_v63, %v528_v37  ;;  %v603_v37 = vmul.f32 %v1486_v8, %v1248_v4 }
 0x12e   : > { %v490_v9 = vadd.f32 %v482_v45, %v464_v59  ;;  %v629_v45 = vmul.f32 %v1498_v50, %v1174_v34  ;;  %v529_v18 = vadd.f32 %v1476_v41, %v521_v36 }
 0x12f   : > { %v608_v31 = vadd.f32 %v600_v44, %v582_v61 }
 0x130   : > { %499 = vst.msk [vmem:[%s1356_s25 + $0x18] sm:$0xff] %vm495_vm0, %v490_v9 }
 0x131   : > { %v634_v16 = vadd.f32 %v626_v55, %v608_v31  ;;  %v601_v55 = vmul.f32 %v1486_v8, %v1285_v42 }
 0x133   : > { %v671_v60 = vpop.permute.xlu2 %670  ;;  %v450_v5 = vpop.permute.xlu1 %449  ;;  %v688_v0 = vadd.f32 %v665_v51, %v634_v16  ;;  %v709_v51 = vmul.f32 %v1509_v52, %v1442_v43  ;;  %v532_v43 = vadd.f32 %v1476_v41, %v524_v11 }
 0x134   : > { %v467_v25 = vadd.f32 %v450_v5, %v413_v19  ;;  %v565_v62 = vpop.permute.xlu0 %564  ;;  %v1551_v19 = vld [vmem:[%s1665_s0 + $0x16] ss:$0 sm:$0xff] }
 0x135   : > { %v585_v54 = vadd.f32 %v565_v62, %v531_v27  ;;  %v1526_v38 = vadd.f32 %v706_v17, %v688_v0  ;;  %v627_v27 = vmul.f32 %v1498_v50, %v1156_v26  ;;  %v522_v17 = vmul.f32 %v1461_v57, %v1129_v14 }
 0x136   : > { %v493_v44 = vadd.f32 %v485_v29, %v467_v25  ;;  %v604_v29 = vmul.f32 %v1486_v8, %v1301_v53  ;;  %v527_v25 = vmul.f32 %v1461_v57, %v1144_v21  ;;  %v733_v62 = vmul.f32 %v1551_v19, %v1129_v14 }
 0x137   : > { %v611_v59 = vadd.f32 %v603_v37, %v585_v54  ;;  %v707_v37 = vmul.f32 %v1509_v52, %v1311_v58  ;;  %v530_v54 = vadd.f32 %v1476_v41, %v522_v17  ;;  %v630_v58 = vmul.f32 %v1498_v50, %v1171_v33 }
 0x138   : > { %502 = vst.msk [vmem:[%s1356_s25 + $0x30] sm:$0xff] %vm495_vm0, %v493_v44  ;;  %v710_v33 = vmul.f32 %v1509_v52, %v1334_v23  ;;  %v633_v23 = vmul.f32 %v1498_v50, %v1177_v35 }
 0x139   : > { %v637_v63 = vadd.f32 %v629_v45, %v611_v59  ;;  %v1564_v45 = vld [vmem:[%s1665_s0 + $0x18] ss:$0 sm:$0xff] }
 0x13a   : > { %v813_v14 = vmul.f32 %v1564_v45, %v1340_v32 }
 0x13b   : > { %v561_v61 = vpop.permute.xlu1 %560  ;;  %v691_v24 = vadd.f32 %v671_v60, %v637_v63  ;;  %v1535_v3 = vpop.permute.xlu2 %676  ;;  %v535_v63 = vadd.f32 %v1476_v41, %v527_v25 }
 0x13c   : > { %v583_v34 = vadd.f32 %v561_v61, %v529_v18  ;;  %v1537_v9 = vpop.permute.xlu0 %570  ;;  %v584_v61 = vadd.f32 %v1431_v12, %v530_v54 }
 0x13d   : > { %v1541_v31 = vadd.f32 %v709_v51, %v691_v24  ;;  %v525_v24 = vmul.f32 %v1461_v57, %v1132_v15 }
 0x13e   : > { %v609_v16 = vadd.f32 %v601_v55, %v583_v34  ;;  %v602_v55 = vmul.f32 %v1486_v8, %v1340_v32  ;;  %v607_v34 = vmul.f32 %v1486_v8, %v1362_v56 }
 0x140   : > { %v635_v5 = vadd.f32 %v627_v27, %v609_v16  ;;  %v610_v12 = vadd.f32 %v602_v55, %v584_v61 }
 0x143   : > { %v567_v60 = vpop.permute.xlu1 %566  ;;  %v773_v44 = vpop.permute.xlu2 %772 }
 0x144   : > { %v586_v0 = vadd.f32 %v567_v60, %v532_v43  ;;  %v667_v26 = vpop.permute.xlu0 %666 }
 0x145   : > { %v689_v36 = vadd.f32 %v667_v26, %v635_v5  ;;  %v533_v5 = vadd.f32 %v1476_v41, %v525_v24 }
 0x146   : > { %v612_v59 = vadd.f32 %v604_v29, %v586_v0  ;;  %v736_v29 = vmul.f32 %v1551_v19, %v1132_v15  ;;  %v816_v15 = vmul.f32 %v1564_v45, %v1373_v1 }
 0x147   : > { %v715_v18 = vadd.f32 %v707_v37, %v689_v36  ;;  %v628_v37 = vmul.f32 %v1498_v50, %v1141_v20  ;;  %v605_v36 = vmul.f32 %v1486_v8, %v1373_v1  ;;  %v587_v54 = vadd.f32 %v1463_v2, %v533_v5 }
 0x148   : > { %v638_v16 = vadd.f32 %v630_v58, %v612_v59  ;;  %v708_v20 = vmul.f32 %v1509_v52, %v1393_v48  ;;  %v713_v58 = vmul.f32 %v1509_v52, %v1398_v49  ;;  %v526_v2 = vmul.f32 %v1461_v57, %v1147_v22 }
 0x149   : > { %v741_v51 = vadd.f32 %v733_v62, %v715_v18  ;;  %v613_v1 = vadd.f32 %v605_v36, %v587_v54  ;;  %v631_v48 = vmul.f32 %v1498_v50, %v1162_v28  ;;  %v734_v49 = vmul.f32 %v1551_v19, %v1111_v6 }
 0x14a   : > { %v711_v57 = vmul.f32 %v1509_v52, %v1419_v39  ;;  %v732_v5 = vmul.f32 %v1551_v19, %v1114_v7 }
 0x14b   : > { %v573_v11 = vpop.permute.xlu1 %572  ;;  %v795_v27 = vadd.f32 %v773_v44, %v741_v51  ;;  %v779_v25 = vpop.permute.xlu2 %778  ;;  %v636_v44 = vadd.f32 %v628_v37, %v610_v12 }
 0x14c   : > { %v589_v43 = vadd.f32 %v573_v11, %v535_v63  ;;  %v673_v17 = vpop.permute.xlu0 %672 }
 0x14d   : > { %v692_v32 = vadd.f32 %v673_v17, %v638_v16  ;;  %v821_v60 = vadd.f32 %v813_v14, %v795_v27  ;;  %v739_v14 = vmul.f32 %v1551_v19, %v1201_v47  ;;  %v819_v47 = vmul.f32 %v1564_v45, %v1413_v46 }
 0x14e   : > { %v615_v0 = vadd.f32 %v607_v34, %v589_v43  ;;  %v534_v16 = vadd.f32 %v1476_v41, %v526_v2  ;;  %v639_v27 = vadd.f32 %v631_v48, %v613_v1  ;;  %v814_v17 = vmul.f32 %v1564_v45, %v1248_v4 }
 0x14f   : > { %v718_v26 = vadd.f32 %v710_v33, %v692_v32  ;;  %838 = vrot.lane.b32.xlu1 %v821_v60, %s1048_s16  ;;  %v606_v46 = vmul.f32 %v1486_v8, %v1437_v10  ;;  %v737_v4 = vmul.f32 %v1551_v19, %v1147_v22  ;;  %v812_v8 = vmul.f32 %v1564_v45, %v1285_v42 }
 0x150   : > { %v641_v18 = vadd.f32 %v633_v23, %v615_v0  ;;  %v588_v41 = vadd.f32 %v1537_v9, %v534_v16  ;;  %v632_v0 = vmul.f32 %v1498_v50, %v1186_v40  ;;  %v740_v9 = vadd.f32 %v732_v5, %v1526_v38 }
 0x151   : > { %v744_v62 = vadd.f32 %v736_v29, %v718_v26  ;;  %v815_v42 = vmul.f32 %v1564_v45, %v1301_v53  ;;  %v818_v53 = vmul.f32 %v1564_v45, %v1362_v56 }
 0x152   : > { %v614_v26 = vadd.f32 %v606_v46, %v588_v41 }
 0x153   : > { %v669_v59 = vpop.permute.xlu1 %668  ;;  %v798_v35 = vadd.f32 %v779_v25, %v744_v62  ;;  %v785_v33 = vpop.permute.xlu2 %784  ;;  %v817_v25 = vmul.f32 %v1564_v45, %v1437_v10  ;;  %v712_v10 = vmul.f32 %v1509_v52, %v1479_v30 }
 0x154   : > { %v690_v63 = vadd.f32 %v669_v59, %v636_v44  ;;  %v679_v51 = vpop.permute.xlu0 %678  ;;  %v640_v22 = vadd.f32 %v632_v0, %v614_v26  ;;  %v735_v44 = vmul.f32 %v1551_v19, %v1126_v13 }
 0x155   : > { %v695_v55 = vadd.f32 %v679_v51, %v641_v18  ;;  %v824_v61 = vadd.f32 %v816_v15, %v798_v35  ;;  %v738_v18 = vmul.f32 %v1551_v19, %v1144_v21 }
 0x156   : > { %v716_v24 = vadd.f32 %v708_v20, %v690_v63  ;;  %v743_v50 = vadd.f32 %v735_v44, %v1541_v31  ;;  %v694_v38 = vadd.f32 %v1535_v3, %v640_v22 }
 0x157   : > { %v721_v34 = vadd.f32 %v713_v58, %v695_v55  ;;  %844 = vrot.lane.b32.xlu1 %v824_v61, %s1048_s16 }
 0x158   : > { %v742_v28 = vadd.f32 %v734_v49, %v716_v24  ;;  %v720_v58 = vadd.f32 %v712_v10, %v694_v38 }
 0x159   : > { %v747_v11 = vadd.f32 %v739_v14, %v721_v34 }
 0x15a   : > { %v746_v30 = vadd.f32 %v738_v18, %v720_v58 }
 0x15b   : > { %v675_v43 = vpop.permute.xlu1 %674  ;;  %v801_v29 = vadd.f32 %v785_v33, %v747_v11 }
 0x15c   : > { %v693_v32 = vadd.f32 %v675_v43, %v639_v27  ;;  %v775_v60 = vpop.permute.xlu0 %774 }
 0x15d   : > { %v796_v6 = vadd.f32 %v775_v60, %v742_v28  ;;  %v827_v12 = vadd.f32 %v819_v47, %v801_v29 }
 0x15e   : > { %v719_v37 = vadd.f32 %v711_v57, %v693_v32 }
 0x15f   : > { %v822_v39 = vadd.f32 %v814_v17, %v796_v6  ;;  %850 = vrot.lane.b32.xlu1 %v827_v12, %s1048_s16 }
 0x160   : > { %v745_v7 = vadd.f32 %v737_v4, %v719_v37 }
 0x161   : > { %840 = vrot.lane.b32.xlu2 %v822_v39, %s1048_s16 }
 0x163   : > { %v771_v23 = vpop.permute.xlu1 %770 }
 0x164   : > { %v794_v62 = vadd.f32 %v771_v23, %v740_v9  ;;  %v781_v15 = vpop.permute.xlu0 %780 }
 0x165   : > { %v799_v36 = vadd.f32 %v781_v15, %v745_v7 }
 0x166   : > { %v820_v54 = vadd.f32 %v812_v8, %v794_v62 }
 0x167   : > { %v825_v40 = vadd.f32 %v817_v25, %v799_v36 }
 0x168   : > { %836 = vrot.lane.b32.xlu0 %v820_v54, %s1048_s16 }
 0x169   : > { %846 = vrot.lane.b32.xlu2 %v825_v40, %s1048_s16 }
 0x16b   : > { %v777_v20 = vpop.permute.xlu1 %776 }
 0x16c   : > { %v797_v59 = vadd.f32 %v777_v20, %v743_v50 }
 0x16e   : > { %v823_v13 = vadd.f32 %v815_v42, %v797_v59 }
 0x170   : > { %842 = vrot.lane.b32.xlu0 %v823_v13, %s1048_s16 }
 0x173   : > { %v783_v52 = vpop.permute.xlu1 %782 }
 0x174   : > { %v800_v3 = vadd.f32 %v783_v52, %v746_v30 }
 0x176   : > { %v826_v31 = vadd.f32 %v818_v53, %v800_v3 }
 0x178   : > { %848 = vrot.lane.b32.xlu0 %v826_v31, %s1048_s16 }
 0x1bb   : > { %v841_v35 = vpop.permute.xlu2 %840 }
 0x1bc   : > { %863 = vst.msk [vmem:[%s1356_s25 + $0x10] sm:$0xff] %vm860_vm1, %v841_v35 }
 0x1c1   : > { %v839_v21 = vpop.permute.xlu1 %838 }
 0x1c2   : > { %862 = vst.msk [vmem:[%s1356_s25 + $0x8] sm:$0xff] %vm860_vm1, %v839_v21 }
 0x1c3   : > { %v847_v19 = vpop.permute.xlu2 %846 }
 0x1c4   : > { %866 = vst.msk [vmem:[%s1356_s25 + $0x28] sm:$0xff] %vm860_vm1, %v847_v19 }
 0x1c9   : > { %v845_v56 = vpop.permute.xlu1 %844 }
 0x1ca   : > { %865 = vst.msk [vmem:[%s1356_s25 + $0x20] sm:$0xff] %vm860_vm1, %v845_v56 }
 0x1d1   : > { %v851_v45 = vpop.permute.xlu1 %850 }
 0x1d2   : > { %868 = vst.msk [vmem:[%s1356_s25 + $0x38] sm:$0xff] %vm860_vm1, %v851_v45 }
 0x1da   : > { %v837_v63 = vpop.permute.xlu0 %836 }
 0x1db   : > { %861 = vst.msk [vmem:[%s1356_s25] sm:$0xff] %vm860_vm1, %v837_v63 }
 0x1e2   : > { %v843_v51 = vpop.permute.xlu0 %842 }
 0x1e3   : > { %864 = vst.msk [vmem:[%s1356_s25 + $0x18] sm:$0xff] %vm860_vm1, %v843_v51 }
 0x1ea   : > { %v849_v14 = vpop.permute.xlu0 %848 }
 0x1eb   : > { %867 = vst.msk [vmem:[%s1356_s25 + $0x30] sm:$0xff] %vm860_vm1, %v849_v14 }
 0x1ec PF: > { %s13_s12 = sadd.s32 1, %s1046_s12  }
 0x1ed   : > { %p10_p4 = scmp.ge.s32.totalorder %s13_s12, 4  }
 0x1ef   :  { %12 = sbr.rel (!%p10_p4) target bundleno = 1 (0x1), region = 66 }

</bundles_post_ra>
